<compile_context>
chip_gen: v5e
topology: v5e:2x2
jax: 0.10.0
libtpu: 0.0.40
codegen_flags: <defaults>
</compile_context>

<pallas_src>
import jax
import jax.numpy as jnp
from jax.experimental import pallas as pl
from jax.experimental.pallas import tpu as pltpu


# --------------------------------------------------------------------------
# Kernel A: RMS_norm + qkv 1x1-conv projection
# --------------------------------------------------------------------------
def qkv_kernel(x_ref, gamma_ref, wqkv_ref, bqkv_ref, q_ref, k_ref, v_ref):
    x = x_ref[0]                                   # (TN, C) f32
    c = x.shape[-1]

    # F.normalize(x, dim=channel) -> x * rsqrt(sum(x^2)); eps clamp like torch.
    sum_sq = jnp.sum(x * x, axis=-1, keepdims=True)
    inv_l2 = jax.lax.rsqrt(jnp.maximum(sum_sq, 1e-24))     # EUP rsqrt, f32
    # gamma_ref already carries the sqrt(C) RMS scale.
    xn = (x * inv_l2) * gamma_ref[...]                     # (TN, C) f32
    xn_bf = xn.astype(jnp.bfloat16)

    # 1x1 conv == matmul over channels.  wqkv is bf16, accumulate in f32.
    qkv = jnp.dot(xn_bf, wqkv_ref[...],
                  preferred_element_type=jnp.float32) + bqkv_ref[...]

    # The 1/sqrt(C) attention scale was folded into the q columns of wqkv/bqkv.
    q_ref[0] = qkv[:, :c].astype(jnp.bfloat16)
    k_ref[0] = qkv[:, c:2 * c].astype(jnp.bfloat16)
    v_ref[0] = qkv[:, 2 * c:].astype(jnp.bfloat16)


# --------------------------------------------------------------------------
# Kernel B: flash attention (online softmax) + output projection + residual
# --------------------------------------------------------------------------
def flash_attn_proj_kernel(q_ref, k_ref, v_ref, xres_ref, wproj_ref, bproj_ref,
                           o_ref, m_sc, l_sc, acc_sc):
    ki = pl.program_id(2)

    @pl.when(ki == 0)
    def _():
        m_sc[...] = jnp.full_like(m_sc, -jnp.inf)
        l_sc[...] = jnp.zeros_like(l_sc)
        acc_sc[...] = jnp.zeros_like(acc_sc)

    q = q_ref[0]                                   # (TQ, C) bf16 (pre-scaled)
    k = k_ref[0]                                   # (TK, C) bf16
    # s = q @ k^T  via dot_general (contract last dims; no explicit transpose)
    s = jax.lax.dot_general(q, k, (((1,), (1,)), ((), ())),
                            preferred_element_type=jnp.float32)   # (TQ, TK) f32

    m_prev = m_sc[...]
    m_new = jnp.maximum(m_prev, jnp.max(s, axis=-1, keepdims=True))
    alpha = jnp.exp(m_prev - m_new)                # f32 softmax statistics
    p = jnp.exp(s - m_new)

    l_sc[...] = alpha * l_sc[...] + jnp.sum(p, axis=-1, keepdims=True)
    acc_sc[...] = alpha * acc_sc[...] + jnp.dot(
        p.astype(jnp.bfloat16), v_ref[0], preferred_element_type=jnp.float32)
    m_sc[...] = m_new

    @pl.when(ki == pl.num_programs(2) - 1)
    def _():
        inv_l = pl.reciprocal(l_sc[...], approx=True)          # EUP reciprocal
        attn = (acc_sc[...] * inv_l).astype(jnp.bfloat16)      # (TQ, C)
        out = jnp.dot(attn, wproj_ref[...],
                      preferred_element_type=jnp.float32)
        o_ref[0] = (out + bproj_ref[...] + xres_ref[0]).astype(o_ref.dtype)


# --------------------------------------------------------------------------
# Wrapper
# --------------------------------------------------------------------------
def attention_block(x, gamma, wqkv, bqkv, wproj, bproj):
    """x: (b, c, t, h, w) float32; weights in PyTorch conv layout."""
    b, c, t, h, w = x.shape
    n = h * w
    bt = b * t

    # NCTHW -> (b*t, h*w, c) channels-last slab.
    # TODO(synk): could be avoided by keeping a (bt, c, n) layout end-to-end.
    x_l = jnp.transpose(x, (0, 2, 3, 4, 1)).reshape(bt, n, c).astype(jnp.float32)

    # --- weight prep (all scale folding done once, in f32, then cast) ---
    scale = 1.0 / jnp.sqrt(jnp.float32(c))
    gamma_s = (gamma.reshape(1, c).astype(jnp.float32)
               * jnp.sqrt(jnp.float32(c)))                       # RMS scale folded
    wqkv_t = wqkv.reshape(3 * c, c).T.astype(jnp.float32)        # (c, 3c)
    bqkv_f = bqkv.reshape(1, 3 * c).astype(jnp.float32)
    # fold the 1/sqrt(C) attention scale into the q columns of wqkv / bqkv
    col_scale = jnp.concatenate(
        [jnp.full((c,), scale, jnp.float32), jnp.ones((2 * c,), jnp.float32)]
    ).reshape(1, 3 * c)
    wqkv_bf = (wqkv_t * col_scale).astype(jnp.bfloat16)
    bqkv_f = bqkv_f * col_scale
    wproj_bf = wproj.reshape(c, c).T.astype(jnp.bfloat16)        # (c, c)
    bproj_f = bproj.reshape(1, c).astype(jnp.float32)

    # Tile choice: lane/sublane-aligned 128-row tiles when possible.
    tile = 128 if n % 128 == 0 else n
    nt = n // tile

    cparams_a = pltpu.CompilerParams(
        dimension_semantics=("parallel", "parallel"),
        vmem_limit_bytes=32 * 1024 * 1024)
    cparams_b = pltpu.CompilerParams(
        dimension_semantics=("parallel", "parallel", "arbitrary"),
        vmem_limit_bytes=32 * 1024 * 1024)

    # ---- Kernel A: RMS norm + qkv projection -> q (scaled), k, v in bf16 ----
    q, k, v = pl.pallas_call(
        qkv_kernel,
        out_shape=(jax.ShapeDtypeStruct((bt, n, c), jnp.bfloat16),) * 3,
        grid_spec=pltpu.PrefetchScalarGridSpec(
            num_scalar_prefetch=0,
            grid=(bt, nt),
            in_specs=[
                pl.BlockSpec((1, tile, c), lambda i, j: (i, j, 0)),   # x tile
                pl.BlockSpec((1, c), lambda i, j: (0, 0)),            # gamma
                pl.BlockSpec((c, 3 * c), lambda i, j: (0, 0)),        # wqkv^T (bf16)
                pl.BlockSpec((1, 3 * c), lambda i, j: (0, 0)),        # bqkv
            ],
            out_specs=[pl.BlockSpec((1, tile, c), lambda i, j: (i, j, 0))] * 3,
        ),
        compiler_params=cparams_a,
    )(x_l, gamma_s, wqkv_bf, bqkv_f)

    # ---- Kernel B: flash attention + output projection + residual ----
    out = pl.pallas_call(
        flash_attn_proj_kernel,
        out_shape=jax.ShapeDtypeStruct((bt, n, c), jnp.float32),
        grid_spec=pltpu.PrefetchScalarGridSpec(
            num_scalar_prefetch=0,
            grid=(bt, nt, nt),
            in_specs=[
                pl.BlockSpec((1, tile, c), lambda bi, qi, ki: (bi, qi, 0)),  # q
                pl.BlockSpec((1, tile, c), lambda bi, qi, ki: (bi, ki, 0)),  # k
                pl.BlockSpec((1, tile, c), lambda bi, qi, ki: (bi, ki, 0)),  # v
                pl.BlockSpec((1, tile, c), lambda bi, qi, ki: (bi, qi, 0)),  # residual
                pl.BlockSpec((c, c), lambda bi, qi, ki: (0, 0)),             # wproj^T
                pl.BlockSpec((1, c), lambda bi, qi, ki: (0, 0)),             # bproj
            ],
            out_specs=pl.BlockSpec((1, tile, c), lambda bi, qi, ki: (bi, qi, 0)),
            scratch_shapes=[
                pltpu.VMEM((tile, 1), jnp.float32),    # m (running max)
                pltpu.VMEM((tile, 1), jnp.float32),    # l (running denom)
                pltpu.VMEM((tile, c), jnp.float32),    # acc
            ],
        ),
        compiler_params=cparams_b,
    )(q, k, v, x_l, wproj_bf, bproj_f)

    # (b*t, h*w, c) -> (b, c, t, h, w)
    return jnp.transpose(out.reshape(b, t, h, w, c), (0, 4, 1, 2, 3)).astype(x.dtype)


# --------------------------------------------------------------------------
# Plain-JAX reference (mirrors the PyTorch forward, f32 everywhere)
# --------------------------------------------------------------------------
def attention_block_ref(x, gamma, wqkv, bqkv, wproj, bproj):
    b, c, t, h, w = x.shape
    xl = jnp.transpose(x, (0, 2, 3, 4, 1)).reshape(b * t, h * w, c)
    l2 = jnp.maximum(jnp.sqrt(jnp.sum(xl * xl, axis=-1, keepdims=True)), 1e-12)
    xn = xl / l2 * jnp.sqrt(jnp.float32(c)) * gamma.reshape(1, 1, c)
    qkv = jnp.einsum('bnc,oc->bno', xn, wqkv.reshape(3 * c, c)) + bqkv.reshape(1, 1, 3 * c)
    q, k, v = qkv[..., :c], qkv[..., c:2 * c], qkv[..., 2 * c:]
    s = jnp.einsum('bnc,bmc->bnm', q, k) / jnp.sqrt(jnp.float32(c))
    p = jax.nn.softmax(s, axis=-1)
    o = jnp.einsum('bnm,bmc->bnc', p, v)
    out = jnp.einsum('bnc,oc->bno', o, wproj.reshape(c, c)) + bproj.reshape(1, 1, c)
    out = out + xl
    return jnp.transpose(out.reshape(b, t, h, w, c), (0, 4, 1, 2, 3))


if __name__ == "__main__":
    key = jax.random.PRNGKey(0)
    kx, kg, kw1, kb1, kw2, kb2 = jax.random.split(key, 6)

    # Small shapes consistent with the 5-D NCTHW input feeding the middle
    # AttentionBlock (c = 128 keeps the channel/lane axis dense; n = 16*16 = 256
    # spatial positions -> 2 query tiles x 2 KV tiles).
    b, c, t, h, w = 1, 128, 2, 16, 16
    x = jax.random.normal(kx, (b, c, t, h, w), dtype=jnp.float32)

    # Parameter shapes from __init__ (deterministic synthetic values).
    gamma = 1.0 + 0.1 * jax.random.normal(kg, (c, 1, 1), dtype=jnp.float32)
    wqkv = jax.random.normal(kw1, (3 * c, c, 1, 1), dtype=jnp.float32) * 0.1
    bqkv = jax.random.normal(kb1, (3 * c,), dtype=jnp.float32) * 0.1
    # NOTE: __init__ zero-inits proj.weight; use non-zero values here so the
    # projection matmul path is actually exercised.
    wproj = jax.random.normal(kw2, (c, c, 1, 1), dtype=jnp.float32) * 0.1
    bproj = jax.random.normal(kb2, (c,), dtype=jnp.float32) * 0.1

    out = attention_block(x, gamma, wqkv, bqkv, wproj, bproj)
    out = jax.block_until_ready(out)

    ref = attention_block_ref(x, gamma, wqkv, bqkv, wproj, bproj)
    assert out.shape == (b, c, t, h, w)
    # bf16 MXU inputs + approx reciprocal -> loosened tolerance vs f32 reference.
    assert jnp.allclose(out, ref, atol=5e-2, rtol=5e-2), "mismatch vs reference"

    print("KERNEL_OK")
</pallas_src>

<mosaic_0001>
module attributes {stable_mosaic.version = 11 : i64} {
  func.func @qkv_kernel(%arg0: i32, %arg1: i32, %arg2: memref<1x128x128xf32, #tpu.memory_space<vmem>>, %arg3: memref<1x128xf32, #tpu.memory_space<vmem>>, %arg4: memref<128x384xbf16, #tpu.memory_space<vmem>>, %arg5: memref<1x384xf32, #tpu.memory_space<vmem>>, %arg6: memref<1x128x128xbf16, #tpu.memory_space<vmem>>, %arg7: memref<1x128x128xbf16, #tpu.memory_space<vmem>>, %arg8: memref<1x128x128xbf16, #tpu.memory_space<vmem>>) attributes {dimension_semantics = [#tpu.dimension_semantics<parallel>, #tpu.dimension_semantics<parallel>], iteration_bounds = array<i64: 2, 2>, scalar_prefetch = 0 : i64, scratch_operands = 0 : i64, tpu.core_type = #tpu.core_type<tc>, window_params = [{transform_indices = @transform_0, window_bounds = array<i64: 1, 128, 128>}, {pipeline_mode = #tpu.pipeline_mode<synchronous>, transform_indices = @transform_1, window_bounds = array<i64: 1, 128>}, {pipeline_mode = #tpu.pipeline_mode<synchronous>, transform_indices = @transform_2, window_bounds = array<i64: 128, 384>}, {pipeline_mode = #tpu.pipeline_mode<synchronous>, transform_indices = @transform_3, window_bounds = array<i64: 1, 384>}, {transform_indices = @transform_4, window_bounds = array<i64: 1, 128, 128>}, {transform_indices = @transform_5, window_bounds = array<i64: 1, 128, 128>}, {transform_indices = @transform_6, window_bounds = array<i64: 1, 128, 128>}]} {
    %c0 = arith.constant 0 : index
    %c0_0 = arith.constant 0 : index
    %c0_1 = arith.constant 0 : index
    %0 = vector.load %arg2[%c0, %c0_0, %c0_1] : memref<1x128x128xf32, #tpu.memory_space<vmem>>, vector<1x128x128xf32>
    %1 = vector.shape_cast %0 : vector<1x128x128xf32> to vector<128x128xf32>
    %2 = arith.mulf %1, %1 : vector<128x128xf32>
    %cst = arith.constant dense<0.000000e+00> : vector<128xf32>
    %3 = vector.multi_reduction <add>, %2, %cst [1] : vector<128x128xf32> to vector<128xf32>
    %4 = vector.shape_cast %3 : vector<128xf32> to vector<128x1xf32>
    %cst_2 = arith.constant 1.000000e-24 : f32
    %5 = vector.broadcast %cst_2 : f32 to vector<128x1xf32>
    %6 = arith.maximumf %4, %5 : vector<128x1xf32>
    %7 = math.rsqrt %6 : vector<128x1xf32>
    %8 = vector.broadcast %7 : vector<128x1xf32> to vector<128x128xf32>
    %9 = arith.mulf %1, %8 : vector<128x128xf32>
    %c0_3 = arith.constant 0 : index
    %c0_4 = arith.constant 0 : index
    %10 = vector.load %arg3[%c0_3, %c0_4] : memref<1x128xf32, #tpu.memory_space<vmem>>, vector<1x128xf32>
    %11 = vector.broadcast %10 : vector<1x128xf32> to vector<128x128xf32>
    %12 = arith.mulf %9, %11 : vector<128x128xf32>
    %13 = arith.truncf %12 : vector<128x128xf32> to vector<128x128xbf16>
    %c0_5 = arith.constant 0 : index
    %c0_6 = arith.constant 0 : index
    %14 = vector.load %arg4[%c0_5, %c0_6] : memref<128x384xbf16, #tpu.memory_space<vmem>>, vector<128x384xbf16>
    %cst_7 = arith.constant dense<0.000000e+00> : vector<128x384xf32>
    %15 = tpu.matmul %13, %14, %cst_7 {dimension_numbers = #tpu.dot_dimension_numbers<[1], [0], [0], [1], [0, 0, 1, 1], [], []>} : vector<128x128xbf16>, vector<128x384xbf16>, vector<128x384xf32> -> vector<128x384xf32>
    %c0_8 = arith.constant 0 : index
    %c0_9 = arith.constant 0 : index
    %16 = vector.load %arg5[%c0_8, %c0_9] : memref<1x384xf32, #tpu.memory_space<vmem>>, vector<1x384xf32>
    %17 = vector.broadcast %16 : vector<1x384xf32> to vector<128x384xf32>
    %18 = arith.addf %15, %17 : vector<128x384xf32>
    %19 = vector.extract_strided_slice %18 {offsets = [0, 0], sizes = [128, 128], strides = [1, 1]} : vector<128x384xf32> to vector<128x128xf32>
    %20 = arith.truncf %19 : vector<128x128xf32> to vector<128x128xbf16>
    %c0_10 = arith.constant 0 : index
    %c0_11 = arith.constant 0 : index
    %c0_12 = arith.constant 0 : index
    %21 = vector.load %arg6[%c0_10, %c0_11, %c0_12] : memref<1x128x128xbf16, #tpu.memory_space<vmem>>, vector<1x128x128xbf16>
    %22 = vector.shape_cast %21 : vector<1x128x128xbf16> to vector<128x128xbf16>
    %23 = vector.shape_cast %20 : vector<128x128xbf16> to vector<1x128x128xbf16>
    tpu.vector_store %arg6[%c0_10, %c0_11, %c0_12], %23 {strides = array<i32>} : memref<1x128x128xbf16, #tpu.memory_space<vmem>>, vector<1x128x128xbf16>,
    %24 = vector.extract_strided_slice %18 {offsets = [0, 128], sizes = [128, 128], strides = [1, 1]} : vector<128x384xf32> to vector<128x128xf32>
    %25 = arith.truncf %24 : vector<128x128xf32> to vector<128x128xbf16>
    %c0_13 = arith.constant 0 : index
    %c0_14 = arith.constant 0 : index
    %c0_15 = arith.constant 0 : index
    %26 = vector.load %arg7[%c0_13, %c0_14, %c0_15] : memref<1x128x128xbf16, #tpu.memory_space<vmem>>, vector<1x128x128xbf16>
    %27 = vector.shape_cast %26 : vector<1x128x128xbf16> to vector<128x128xbf16>
    %28 = vector.shape_cast %25 : vector<128x128xbf16> to vector<1x128x128xbf16>
    tpu.vector_store %arg7[%c0_13, %c0_14, %c0_15], %28 {strides = array<i32>} : memref<1x128x128xbf16, #tpu.memory_space<vmem>>, vector<1x128x128xbf16>,
    %29 = vector.extract_strided_slice %18 {offsets = [0, 256], sizes = [128, 128], strides = [1, 1]} : vector<128x384xf32> to vector<128x128xf32>
    %30 = arith.truncf %29 : vector<128x128xf32> to vector<128x128xbf16>
    %c0_16 = arith.constant 0 : index
    %c0_17 = arith.constant 0 : index
    %c0_18 = arith.constant 0 : index
    %31 = vector.load %arg8[%c0_16, %c0_17, %c0_18] : memref<1x128x128xbf16, #tpu.memory_space<vmem>>, vector<1x128x128xbf16>
    %32 = vector.shape_cast %31 : vector<1x128x128xbf16> to vector<128x128xbf16>
    %33 = vector.shape_cast %30 : vector<128x128xbf16> to vector<1x128x128xbf16>
    tpu.vector_store %arg8[%c0_16, %c0_17, %c0_18], %33 {strides = array<i32>} : memref<1x128x128xbf16, #tpu.memory_space<vmem>>, vector<1x128x128xbf16>,
    return
  }
  func.func @transform_0(%arg0: i32, %arg1: i32) -> (i32, i32, i32) {
    %c0_i32 = arith.constant 0 : i32
    %c0_i32_0 = arith.constant 0 : i32
    return %arg0, %arg1, %c0_i32 : i32, i32, i32
  }
  func.func @transform_1(%arg0: i32, %arg1: i32) -> (i32, i32) {
    %c0_i32 = arith.constant 0 : i32
    %c0_i32_0 = arith.constant 0 : i32
    %c0_i32_1 = arith.constant 0 : i32
    return %c0_i32, %c0_i32_0 : i32, i32
  }
  func.func @transform_2(%arg0: i32, %arg1: i32) -> (i32, i32) {
    %c0_i32 = arith.constant 0 : i32
    %c0_i32_0 = arith.constant 0 : i32
    %c0_i32_1 = arith.constant 0 : i32
    return %c0_i32, %c0_i32_0 : i32, i32
  }
  func.func @transform_3(%arg0: i32, %arg1: i32) -> (i32, i32) {
    %c0_i32 = arith.constant 0 : i32
    %c0_i32_0 = arith.constant 0 : i32
    %c0_i32_1 = arith.constant 0 : i32
    return %c0_i32, %c0_i32_0 : i32, i32
  }
  func.func @transform_4(%arg0: i32, %arg1: i32) -> (i32, i32, i32) {
    %c0_i32 = arith.constant 0 : i32
    %c0_i32_0 = arith.constant 0 : i32
    return %arg0, %arg1, %c0_i32 : i32, i32, i32
  }
  func.func @transform_5(%arg0: i32, %arg1: i32) -> (i32, i32, i32) {
    %c0_i32 = arith.constant 0 : i32
    %c0_i32_0 = arith.constant 0 : i32
    return %arg0, %arg1, %c0_i32 : i32, i32, i32
  }
  func.func @transform_6(%arg0: i32, %arg1: i32) -> (i32, i32, i32) {
    %c0_i32 = arith.constant 0 : i32
    %c0_i32_0 = arith.constant 0 : i32
    return %arg0, %arg1, %c0_i32 : i32, i32, i32
  }
}

</mosaic_0001>

<bundles_post_ra>
// kernel: tpu_custom_call.1
= control target key start
LH: loop header
LB: loop body
LE: loop exit
PB: predicated region body
PF: predicated region fallthrough
CT: control target
= control target key end

     0   :  { %s2851_s0 = inlined_call_operand.hbm [shape: f32[2,256,128], index: 0, kind: input, shape index: {}]   ;;  %s2852_s1 = inlined_call_operand.hbm [shape: f32[1,128], index: 1, kind: input, shape index: {}]   ;;  %s2853_s2 = inlined_call_operand.hbm [shape: bf16[128,384], index: 2, kind: input, shape index: {}]   ;;  %s2854_s3 = inlined_call_operand.hbm [shape: f32[1,384], index: 3, kind: input, shape index: {}]   ;;  %s2855_s4 = inlined_call_operand.hbm [shape: bf16[2,256,128], index: 4, kind: output, shape index: {0}]   ;;  %s2856_s5 = inlined_call_operand.hbm [shape: bf16[2,256,128], index: 5, kind: output, shape index: {1}]   ;;  %s2857_s6 = inlined_call_operand.hbm [shape: bf16[2,256,128], index: 6, kind: output, shape index: {2}]  }
   0x1   :  { %2866 = sst [smem:[#allocation24_spill]] %s2852_s1 }
   0x2   :  { %2867 = sst [smem:[#allocation25_spill]] %s2853_s2 }
   0x3   :  { %2868 = sst [smem:[#allocation26_spill]] %s2854_s3 }
   0x4   :  { %2869 = sst [smem:[#allocation27_spill]] %s2857_s6 }
   0x5   :  { %12 = vsyncpa [#allocation3], 0 }
   0x6   :  { %14 = vsyncpa [#allocation3 + $0x1], 0 }
   0x7   :  { %15 = vsyncpa [#allocation6], 0 }
   0x8   :  { %16 = vsyncpa [#allocation9], 0 }
   0x9   :  { %17 = vsyncpa [#allocation4], 0 }
   0xa   :  { %19 = vsyncpa [#allocation4 + $0x1], 0 }
   0xb   :  { %20 = vsyncpa [#allocation12], 0 }
   0xc   :  { %22 = vsyncpa [#allocation12 + $0x1], 0  ;;  %s2119_s21 = smov 0   ;;  %s2121_s22 = smov 0  }
   0xd   :  { %s2123_s23 = smov 0   ;;  %s2125_s24 = smov 0  }
   0xe   :  { %s2127_s25 = smov 0   ;;  %s2129_s26 = smov 0  }
   0xf   :  { %s2131_s27 = smov 0   ;;  %s2133_s28 = smov 0  }
  0x10 LB: > { %2870 = sst [smem:[#allocation19_spill]] %s2045_s21  ;;  %s2160_s29 = sadd.s32 4294967295, %s2073_s28   ;;  %s2073_s28 = sphi %s2133_s28, %s28_s28   ;;  %s2069_s27 = sphi %s2131_s27, %s2909_s27   ;;  %s2065_s26 = sphi %s2129_s26, %s2904_s26   ;;  %s2061_s25 = sphi %s2127_s25, %s2908_s25   ;;  %s2057_s24 = sphi %s2125_s24, %s2903_s24   ;;  %s2053_s23 = sphi %s2123_s23, %s2907_s23   ;;  %s2049_s22 = sphi %s2121_s22, %s2906_s22   ;;  %s2045_s21 = sphi %s2119_s21, %s2905_s21  }
  0x11   : > { %2871 = sst [smem:[#allocation20_spill]] %s2065_s26  ;;  %s2858_s30 = sadd.s32 4294967294, %s2073_s28  }
  0x12   : > { %p62_p0 = scmp.ne.s32.totalorder %s2049_s22, %s2045_s21  ;;  %p63_p1 = scmp.eq.s32.totalorder %s2160_s29, 0 }
  0x13   : > { %p151_p2 = scmp.eq.s32.totalorder %s2160_s29, 3  ;;  %p157_p3 = scmp.eq.s32.totalorder %s2858_s30, 3 }
  0x14   : > { %p2171_p4 = por %p63_p1, %p62_p0  ;;  %p1313_p5 = scmp.ge.s32.totalorder %s2073_s28, 1 }
  0x15   : > { %p2176_p6 = por %p157_p3, %p62_p0  ;;  %p220_p7 = scmp.lt.s32.totalorder %s2073_s28, 5 }
  0x16   : > { %s2875_s1 = sld [smem:[#allocation24_spill]]  ;;  %s2075_s13 = smov [#allocation5]  }
  0x17   : > { %s2873_s8 = scalar_select %p2176_p6, 1, 0 }
  0x18   : > { %p2184_p8 = pnand %p1313_p5, %p220_p7  ;;  %s234_s14 = sshll.u32 %s2075_s13, 4  ;;  %s235_s14 = int_to_ptr.vmem [resolvable:$true] %s234_s14 }
  0x19   : > { %2874 = sst [smem:[#allocation21_spill]] %s2873_s8  ;;  %s2076_s19 = smov [#allocation7]  }
  0x1a   : > { %p1649_p9 = pneg %p2184_p8  ;;  %s2877_s2 = sld [smem:[#allocation25_spill]] }
  0x1b   : > { %s245_s20 = sshll.u32 %s2076_s19, 4  ;;  %s2077_s9 = smov 192   ;;  %s246_s20 = int_to_ptr.vmem [resolvable:$true] %s245_s20 }
  0x1c   : > { %s232_s11 = sshll.u32 %s2875_s1, 4  ;;  %p2195_p10 = pnand %p1649_p9, %p63_p1  ;;  %s233_s11 = int_to_ptr.hbm [resolvable:$true] %s232_s11 }
  0x1d   : > { %s2078_s10 = smov 12   ;;  %s2879_s3 = sld [smem:[#allocation26_spill]] }
  0x1e   : > { %1652 = dma.hbm_to_vmem [thread:$0]  (!%p2195_p10), %s233_s11, 16, %s235_s14, [#allocation6]  }
  0x1f   : > { %s2079_s30 = smov [#allocation8]   ;;  %s37_s11 = sadd.s32 1, %s2065_s26 }
  0x20   : > { %s243_s17 = sshll.u32 %s2877_s2, 4  ;;  %s260_s19 = sshll.u32 %s2079_s30, 4  ;;  %s244_s17 = int_to_ptr.hbm [resolvable:$true] %s243_s17  ;;  %s261_s19 = int_to_ptr.vmem [resolvable:$true] %s260_s19 }
  0x21   : > { %1655 = dma.hbm_to_vmem [thread:$0]  (!%p2195_p10), %s244_s17, 3072, %s246_s20, [#allocation6], %s2077_s9, %s2077_s9, %s2078_s10  }
  0x22   : > { %p38_p11 = scmp.ge.s32.totalorder %s37_s11, 2  ;;  %s40_s14 = sadd.s32 1, %s2069_s27 }
  0x23   : > { %s258_s16 = sshll.u32 %s2879_s3, 4  ;;  %s49_s1 = sadd.s32 1, %s2053_s23  ;;  %s259_s16 = int_to_ptr.hbm [resolvable:$true] %s258_s16 }
  0x24   : > { %1658 = dma.hbm_to_vmem [thread:$0]  (!%p2195_p10), %s259_s16, 48, %s261_s19, [#allocation9]  }
  0x25   : > { %p56_p12 = scmp.ne.s32.totalorder %s2053_s23, %s2049_s22  ;;  %s2911_s11 = smov (%p38_p11, %s37_s11), 0 }
  0x26   : > { %2880 = sst [smem:[#allocation22_spill]] %s2911_s11  ;;  %s2913_s14 = smov (!%p38_p11, %s40_s14), %s2069_s27 }
  0x27   : > { %s45_s17 = ssub.s32 %s2065_s26, %s2911_s11  ;;  %p57_p13 = scmp.eq.s32.totalorder %s2073_s28, 0 }
  0x28   : > { %p42_p0 = scmp.ge.s32.totalorder %s2913_s14, 2  ;;  %p2221_p3 = por %p151_p2, %p56_p12 }
  0x29   : > { %p2225_p5 = por %p57_p13, %p56_p12  ;;  %p1676_p7 = scmp.lt.s32.totalorder %s2073_s28, 4 }
  0x2a   : > { %s2881_s30 = scalar_select %p2221_p3, 1, 0 }
  0x2b   : > { %s2915_s14 = smov (%p42_p0, %s2913_s14), 0  ;;  %s271_s20 = sand.u32 1, %s2053_s23  }
  0x2c   : > { %2882 = sst [smem:[#allocation23_spill]] %s2881_s30  ;;  %s1319_s9 = sshll.u32 %s2065_s26, 4 }
  0x2d   : > { %s44_s10 = ssub.s32 %s2069_s27, %s2915_s14  ;;  %s1318_s15 = sshll.u32 %s271_s20, 7 }
  0x2e   : > { %s46_s13 = sor.u32 %s45_s17, %s44_s10  ;;  %s1320_s16 = sshll.u32 %s2069_s27, 5 }
  0x2f   : > { %p47_p9 = scmp.eq.s32.totalorder %s46_s13, 0  ;;  %s275_s19 = scalar_lea.vmem [#allocation2], %s1318_s15 }
  0x30   : > { %s285_s2 = sshll.u32 %s275_s19, 4  ;;  %s280_s11 = sadd.s32 %s1320_s16, %s1319_s9  ;;  %s286_s2 = int_to_ptr.vmem [resolvable:$true] %s285_s2 }
  0x31   : > { %s2238_s3 = scalar_select %p47_p9, %s2053_s23, %s49_s1  }
  0x32   : > { %s1321_s8 = sshll.u32 %s280_s11, 3  ;;  %p1660_p2 = pnand %p1676_p7, %p2225_p5 }
  0x33   : > { %s282_s6 = scalar_lea.hbm %s2851_s0, %s1321_s8  ;;  %s272_s17 = scalar_lea.sflag [#allocation3], %s271_s20 }
  0x34   : > { %s283_s26 = sshll.u32 %s282_s6, 4  ;;  %s2080_s10 = smov 128   ;;  %s284_s26 = int_to_ptr.hbm [resolvable:$true] %s283_s26 }
  0x35   : > { %s2081_s13 = smov 8   ;;  %297 = sbr.rel (%p2184_p8) target bundleno = 466 (0x1d2), region = 36 }
  0x36   : > { %1662 = dma.hbm_to_vmem [thread:$0]  (!%p1660_p2), %s284_s26, 2048, %s286_s2, %s272_s17, %s2080_s10, %s2080_s10, %s2081_s13  }
  0x37   : > { %s2250_s1 = sand.u32 (!%p2184_p8), 1, %s2049_s22  }
  0x38   : > { %s1323_s11 = sshll.u32 (!%p2184_p8), %s2250_s1, 7  ;;  %s300_s18 = scalar_lea.sflag (!%p2184_p8), [#allocation3], %s2250_s1 }
  0x39   : > { %s2254_s9 = scalar_lea.vmem (!%p2184_p8), [#allocation2], %s1323_s11 }
  0x3a   : > { %2024 = dma.done.wait (%p2171_p4), %s300_s18, 2048  }
  0x3b   : > { %2026 = vsyncadd (%p2171_p4), %s300_s18, 4294965248 }
  0x3c   : > { %2028 = dma.done.wait (%p63_p1), [#allocation6], 3088  }
  0x3d   : > { %2030 = vsyncadd (%p63_p1), [#allocation6], 4294964208 }
  0x3e   : > { %2032 = dma.done.wait (%p63_p1), [#allocation9], 48  }
  0x3f   : > { %2034 = vsyncadd (%p63_p1), [#allocation9], 4294967248  ;;  %v2269_v0 = vld [vmem:[%s2254_s9 + $0x60] sm:$0xff]  ;;  %v2272_v1 = vld [vmem:[%s2254_s9 + $0x10] sm:$0xff]  ;;  %s1327_s2 = sshll.u32 %s2250_s1, 6  ;;  %s1429_s7 = sshll.u32 %s2057_s24, 4 }
  0x40   : > { %v2275_v2 = vld [vmem:[%s2254_s9] sm:$0xff]  ;;  %v390_v3 = vmul.f32 %v2269_v0, %v2269_v0  ;;  %v380_v4 = vmul.f32 %v2272_v1, %v2272_v1  ;;  %v2284_v6 = vld [vmem:[%s2254_s9 + $0x68] sm:$0xff]  ;;  %v2287_v7 = vld [vmem:[%s2254_s9 + $0x18] sm:$0xff]  ;;  %s2659_s6 = scalar_lea.vmem [#allocation10], %s1327_s2  ;;  %s2663_s21 = scalar_lea.vmem [#allocation11], %s1327_s2 }
  0x41   : > { %v378_v5 = vmul.f32 %v2275_v2, %v2275_v2  ;;  %v2290_v8 = vld [vmem:[%s2254_s9 + $0x8] sm:$0xff]  ;;  %v391_v9 = vmul.f32 %v2284_v6, %v2284_v6  ;;  %v381_v10 = vmul.f32 %v2287_v7, %v2287_v7  ;;  %v2299_v12 = vld [vmem:[%s2254_s9 + $0x78] sm:$0xff]  ;;  %v2302_v13 = vld [vmem:[%s2254_s9 + $0x20] sm:$0xff]  ;;  %s2669_s26 = scalar_lea.vmem [#allocation13], %s1327_s2  ;;  %s1430_s8 = sshll.u32 %s2061_s25, 5 }
  0x42   : > { %418 = vadd.xlane.f32.xlu1 %v390_v3  ;;  %398 = vadd.xlane.f32.xlu2 %v380_v4  ;;  %v379_v11 = vmul.f32 %v2290_v8, %v2290_v8  ;;  %v2305_v14 = vld [vmem:[%s2254_s9 + $0x70] sm:$0xff]  ;;  %v393_v15 = vmul.f32 %v2299_v12, %v2299_v12  ;;  %v382_v16 = vmul.f32 %v2302_v13, %v2302_v13  ;;  %v2317_v19 = vld [vmem:[%s2254_s9 + $0x38] sm:$0xff]  ;;  %v2320_v20 = vld [vmem:[%s2254_s9 + $0x28] sm:$0xff]  ;;  %s1079_s12 = sadd.s32 %s1430_s8, %s1429_s7  ;;  %s1082_s24 = sshll.u32 %s2659_s6, 4  ;;  %s2735_s24 = int_to_ptr.vmem [resolvable:$true] %s1082_s24 }
  0x43   : > { %394 = vadd.xlane.f32.xlu0 %v378_v5  ;;  %v392_v17 = vmul.f32 %v2305_v14, %v2305_v14  ;;  %v2314_v18 = vld [vmem:[%s2254_s9 + $0x30] sm:$0xff]  ;;  %v385_v22 = vmul.f32 %v2317_v19, %v2317_v19  ;;  %v383_v23 = vmul.f32 %v2320_v20, %v2320_v20  ;;  %v2329_v24 = vld [vmem:[%s2254_s9 + $0x48] sm:$0xff]  ;;  %v2335_v26 = vld [vmem:[%s2254_s9 + $0x40] sm:$0xff]  ;;  %s2721_s30 = sshll.u32 %s1079_s12, 2  ;;  %s1101_s25 = sshll.u32 %s2663_s21, 4  ;;  %s2737_s25 = int_to_ptr.vmem [resolvable:$true] %s1101_s25 }
  0x44   : > { %v384_v21 = vmul.f32 %v2314_v18, %v2314_v18  ;;  %v2332_v25 = vld [vmem:[%s2254_s9 + $0x50] sm:$0xff]  ;;  %v387_v27 = vmul.f32 %v2329_v24, %v2329_v24  ;;  %v386_v29 = vmul.f32 %v2335_v26, %v2335_v26  ;;  %v2344_v30 = vld [vmem:[%s2254_s9 + $0x58] sm:$0xff]  ;;  %v1416_v32 = vld [vmem:[#allocation7 + $0xa8] sm:$0xf]  ;;  %s1100_s16 = scalar_lea.hbm %s2856_s5, %s2721_s30  ;;  %s1062_s19 = sand.u32 1, %s2160_s29  }
  0x45   : > { %v388_v28 = vmul.f32 %v2332_v25, %v2332_v25  ;;  %v389_v31 = vmul.f32 %v2344_v30, %v2344_v30  ;;  %v1462_v33 = vld [vmem:[#allocation7 + $0xb0] sm:$0xf0]  ;;  %v1461_v34 = vld [vmem:[#allocation7 + $0xac] sm:$0xf]  ;;  %v1418_v36 = vld [vmem:[#allocation7 + $0xb4] sm:$0xf0]  ;;  %s1081_s13 = scalar_lea.hbm %s2855_s4, %s2721_s30 }
  0x46   : > { %v1417_v35 = vor.u32 %v1462_v33, %v1416_v32  ;;  %v1424_v37 = vld [vmem:[#allocation7 + $0xb0] sm:$0xf]  ;;  %v1463_v38 = vld [vmem:[#allocation7 + $0xb8] sm:$0xf0]  ;;  %v2348_v39 = vor.u32 %v1461_v34, %v1418_v36  ;;  %v1458_v43 = vld [vmem:[#allocation7 + $0x94] sm:$0xf] }
  0x47   : > { %v2350_v40 = vor.u32 %v1463_v38, %v1424_v37  ;;  %v1404_v41 = vld [vmem:[#allocation7 + $0x90] sm:$0xf]  ;;  %v1459_v42 = vld [vmem:[#allocation7 + $0x98] sm:$0xf0]  ;;  %v1406_v45 = vld [vmem:[#allocation7 + $0x9c] sm:$0xf0] }
  0x48   : > { %814 = vmatpush.bf16.msra.mxu0 %v1417_v35  ;;  %1605 = vmatpush.bf16.msra.mxu3 %v1417_v35  ;;  %v1405_v44 = vor.u32 %v1459_v42, %v1404_v41  ;;  %v1412_v46 = vld [vmem:[#allocation7 + $0x98] sm:$0xf]  ;;  %v1460_v47 = vld [vmem:[#allocation7 + $0xa0] sm:$0xf0]  ;;  %v2354_v48 = vor.u32 %v1458_v43, %v1406_v45  ;;  %v1455_v52 = vld [vmem:[#allocation7 + $0x7c] sm:$0xf] }
  0x49   : > { %863 = vmatpush.bf16.msra.mxu1 %v2348_v39  ;;  %912 = vmatpush.bf16.msra.mxu2 %v2350_v40  ;;  %v2356_v49 = vor.u32 %v1460_v47, %v1412_v46  ;;  %v1392_v50 = vld [vmem:[#allocation7 + $0x78] sm:$0xf]  ;;  %v1456_v51 = vld [vmem:[#allocation7 + $0x80] sm:$0xf0]  ;;  %v1394_v54 = vld [vmem:[#allocation7 + $0x84] sm:$0xf0] }
  0x4a   : > { %420 = vadd.xlane.f32.xlu1 %v391_v9  ;;  %400 = vadd.xlane.f32.xlu2 %v381_v10  ;;  %v1393_v53 = vor.u32 %v1456_v51, %v1392_v50  ;;  %v1400_v55 = vld [vmem:[#allocation7 + $0x80] sm:$0xf]  ;;  %v1457_v56 = vld [vmem:[#allocation7 + $0x88] sm:$0xf0]  ;;  %v2360_v57 = vor.u32 %v1455_v52, %v1394_v54  ;;  %v1452_v61 = vld [vmem:[#allocation7 + $0x64] sm:$0xf] }
  0x4b   : > { %396 = vadd.xlane.f32.xlu0 %v379_v11  ;;  %v2362_v58 = vor.u32 %v1457_v56, %v1400_v55  ;;  %v1380_v59 = vld [vmem:[#allocation7 + $0x60] sm:$0xf]  ;;  %v1453_v60 = vld [vmem:[#allocation7 + $0x68] sm:$0xf0]  ;;  %v1382_v63 = vld [vmem:[#allocation7 + $0x6c] sm:$0xf0] }
  0x4c   : > { %815 = vmatpush.bf16.msra.mxu0 %v1405_v44  ;;  %1606 = vmatpush.bf16.msra.mxu3 %v1405_v44  ;;  %v1381_v62 = vor.u32 %v1453_v60, %v1380_v59  ;;  %v1388_v3 = vld [vmem:[#allocation7 + $0x68] sm:$0xf]  ;;  %v1454_v4 = vld [vmem:[#allocation7 + $0x70] sm:$0xf0]  ;;  %v2366_v5 = vor.u32 %v1452_v61, %v1382_v63  ;;  %v1358_v33 = vld [vmem:[#allocation7 + $0x3c] sm:$0xf0] }
  0x4d   : > { %864 = vmatpush.bf16.msra.mxu1 %v2354_v48  ;;  %913 = vmatpush.bf16.msra.mxu2 %v2356_v49  ;;  %v2368_v9 = vor.u32 %v1454_v4, %v1388_v3  ;;  %v1368_v10 = vld [vmem:[#allocation7 + $0x48] sm:$0xf]  ;;  %v1450_v11 = vld [vmem:[#allocation7 + $0x50] sm:$0xf0]  ;;  %v1364_v34 = vld [vmem:[#allocation7 + $0x38] sm:$0xf] }
  0x4e   : > { %v1448_v35 = vld [vmem:[#allocation7 + $0x40] sm:$0xf0]  ;;  %v1344_v38 = vld [vmem:[#allocation7 + $0x18] sm:$0xf]  ;;  %v1443_v42 = vld [vmem:[#allocation7 + $0x1c] sm:$0xf] }
  0x4f   : > { %v2380_v37 = vor.u32 %v1448_v35, %v1364_v34  ;;  %v1444_v41 = vld [vmem:[#allocation7 + $0x20] sm:$0xf0]  ;;  %v1346_v44 = vld [vmem:[#allocation7 + $0x24] sm:$0xf0]  ;;  %v1352_v45 = vld [vmem:[#allocation7 + $0x20] sm:$0xf] }
  0x50   : > { %816 = vmatpush.bf16.msra.mxu0 %v1393_v53  ;;  %1607 = vmatpush.bf16.msra.mxu3 %v1393_v53  ;;  %v1345_v43 = vor.u32 %v1444_v41, %v1344_v38  ;;  %v1445_v46 = vld [vmem:[#allocation7 + $0x28] sm:$0xf0]  ;;  %v2384_v51 = vor.u32 %v1443_v42, %v1346_v44  ;;  %v1332_v56 = vld [vmem:[#allocation7] sm:$0xf]  ;;  %v1440_v61 = vld [vmem:[#allocation7 + $0x4] sm:$0xf] }
  0x51   : > { %865 = vmatpush.bf16.msra.mxu1 %v2360_v57  ;;  %914 = vmatpush.bf16.msra.mxu2 %v2362_v58  ;;  %v2386_v52 = vor.u32 %v1445_v46, %v1352_v45  ;;  %v1441_v59 = vld [vmem:[#allocation7 + $0x8] sm:$0xf0]  ;;  %v1340_v63 = vld [vmem:[#allocation7 + $0x8] sm:$0xf]  ;;  %v1442_v4 = vld [vmem:[#allocation7 + $0x10] sm:$0xf0] }
  0x52   : > { %424 = vadd.xlane.f32.xlu1 %v393_v15  ;;  %402 = vadd.xlane.f32.xlu2 %v382_v16  ;;  %v1449_v15 = vld [vmem:[#allocation7 + $0x4c] sm:$0xf]  ;;  %v1369_v16 = vor.u32 %v1450_v11, %v1368_v10  ;;  %v1333_v60 = vor.u32 %v1441_v59, %v1332_v56  ;;  %v2398_v10 = vor.u32 %v1442_v4, %v1340_v63  ;;  %s2743_s29 = sshll.u32 %s1100_s16, 4  ;;  %s2745_s11 = sshll.u32 %s1081_s13, 4  ;;  %s1104_s29 = int_to_ptr.hbm [resolvable:$true] %s2743_s29  ;;  %s1085_s11 = int_to_ptr.hbm [resolvable:$true] %s2745_s11 }
  0x53   : > { %422 = vadd.xlane.f32.xlu0 %v392_v17  ;;  %v1370_v17 = vld [vmem:[#allocation7 + $0x54] sm:$0xf0]  ;;  %s2898_s2 = sld [smem:[#allocation27_spill]]  ;;  %s1120_s12 = sshll.u32 %s2669_s26, 4  ;;  %s1121_s12 = int_to_ptr.vmem [resolvable:$true] %s1120_s12 }
  0x54   : > { %817 = vmatpush.bf16.msra.mxu0 %v1381_v62  ;;  %1608 = vmatpush.bf16.msra.mxu3 %v1381_v62  ;;  %v1334_v62 = vld [vmem:[#allocation7 + $0xc] sm:$0xf0]  ;;  %s2760_s15 = scalar_lea.sflag [#allocation12], %s1062_s19  ;;  %s1921_s16 = sshra.s32 %s1104_s29, 4  ;;  %s1922_s16 = int_to_ptr.hbm [resolvable:$true] %s1921_s16 }
  0x55   : > { %866 = vmatpush.bf16.msra.mxu1 %v2366_v5  ;;  %915 = vmatpush.bf16.msra.mxu2 %v2368_v9  ;;  %v2395_v3 = vor.u32 %v1440_v61, %v1334_v62  ;;  %s1927_s10 = scalar_lea.hbm %s2856_s5, 256  ;;  %p1928_p10 = scmp.lt.s32.totalorder %s1922_s16, %s2856_s5 }
  0x58   : > { %818 = vmatpush.bf16.msra.mxu0 %v1369_v16  ;;  %1609 = vmatpush.bf16.msra.mxu3 %v1369_v16 }
  0x59   : > { %s1119_s7 = scalar_lea.hbm %s2898_s2, %s2721_s30  ;;  %s1923_s30 = scalar_lea.hbm %s1922_s16, 64 }
  0x5a   : > { %406 = vadd.xlane.f32.xlu1 %v384_v21  ;;  %408 = vadd.xlane.f32.xlu2 %v385_v22  ;;  %v1376_v21 = vld [vmem:[#allocation7 + $0x50] sm:$0xf]  ;;  %v1451_v22 = vld [vmem:[#allocation7 + $0x58] sm:$0xf0]  ;;  %s2758_s20 = sshll.u32 %s1119_s7, 4  ;;  %p1924_p1 = scmp.ne.s32.totalorder %s1922_s16, %s1923_s30  ;;  %s1123_s20 = int_to_ptr.hbm [resolvable:$true] %s2758_s20 }
  0x5b   : > { %404 = vadd.xlane.f32.xlu0 %v383_v23  ;;  %v2372_v23 = vor.u32 %v1449_v15, %v1370_v17  ;;  %p1929_p11 = scmp.lt.s32.totalorder %s1927_s10, %s1923_s30 }
  0x5c   : > { %p1925_p4 = pnand %p1924_p1, %p2221_p3 }
  0x5d   : > { %867 = vmatpush.bf16.msra.mxu1 %v2372_v23  ;;  %p1930_p12 = por %p1929_p11, %p1928_p10 }
  0x5e   : > { %p1926_p8 = pneg %p1925_p4 }
  0x60   : > { %p1931_p13 = pnand %p1930_p12, %p1926_p8 }
  0x62   : > { %412 = vadd.xlane.f32.xlu1 %v387_v27  ;;  %414 = vadd.xlane.f32.xlu2 %v388_v28  ;;  %v2374_v27 = vor.u32 %v1451_v22, %v1376_v21  ;;  %v1356_v28 = vld [vmem:[#allocation7 + $0x30] sm:$0xf] }
  0x63   : > { %410 = vadd.xlane.f32.xlu0 %v386_v29  ;;  %v1447_v29 = vld [vmem:[#allocation7 + $0x38] sm:$0xf0] }
  0x64   : > { %916 = vmatpush.bf16.msra.mxu2 %v2374_v27  ;;  %v1357_v32 = vor.u32 %v1447_v29, %v1356_v28 }
  0x66   : > { %819 = vmatpush.bf16.msra.mxu0 %v1357_v32  ;;  %1610 = vmatpush.bf16.msra.mxu3 %v1357_v32 }
  0x68   : > { %917 = vmatpush.bf16.msra.mxu2 %v2380_v37 }
  0x6a   : > { %820 = vmatpush.bf16.msra.mxu0 %v1345_v43  ;;  %1611 = vmatpush.bf16.msra.mxu3 %v1345_v43 }
  0x6b   : > { %416 = vadd.xlane.f32.xlu0 %v389_v31  ;;  %v1446_v31 = vld [vmem:[#allocation7 + $0x34] sm:$0xf] }
  0x6c   : > { %v2378_v36 = vor.u32 %v1446_v31, %v1358_v33  ;;  %918 = vmatpush.bf16.msra.mxu2 %v2386_v52 }
  0x6e   : > { %868 = vmatpush.bf16.msra.mxu1 %v2378_v36  ;;  %821 = vmatpush.bf16.msra.mxu0 %v1333_v60 }
  0x6f   : > { %1612 = vmatpush.bf16.msra.mxu3 %v1333_v60 }
  0x70   : > { %919 = vmatpush.bf16.msra.mxu2 %v2398_v10 }
  0x72   : > { %869 = vmatpush.bf16.msra.mxu1 %v2384_v51 }
  0x73   : > { %1613 = vmatpush.bf16.msrb.mxu3 %v2348_v39 }
  0x76   : > { %870 = vmatpush.bf16.msra.mxu1 %v2395_v3 }
  0x77   : > { %1614 = vmatpush.bf16.msrb.mxu3 %v2354_v48 }
  0x7b   : > { %1615 = vmatpush.bf16.msrb.mxu3 %v2360_v57 }
  0x7f   : > { %1616 = vmatpush.bf16.msrb.mxu3 %v2366_v5 }
  0x83   : > { %1617 = vmatpush.bf16.msrb.mxu3 %v2372_v23 }
  0x87   : > { %1618 = vmatpush.bf16.msrb.mxu3 %v2378_v36 }
  0x8b   : > { %1619 = vmatpush.bf16.msrb.mxu3 %v2384_v51 }
  0x8f   : > { %1620 = vmatpush.bf16.msrb.mxu3 %v2395_v3 }
  0xb5   : > { %v419_v47 = vpop.xlane.xlu1 %418  ;;  %v399_v50 = vpop.xlane.xlu2 %398 }
  0xb6   : > { %v2388_v53 = vmax.f32 %v419_v47, 1e-24  ;;  %v395_v54 = vpop.xlane.xlu0 %394  ;;  %v2400_v11 = vmax.f32 %v399_v50, 1e-24 }
  0xb7   : > { %v2390_v55 = vmax.f32 %v395_v54, 1e-24 }
  0xb8   : > { %1755 = vrsqrt.f32 %v2388_v53  ;;  %vm568_vm1 = vweird.f32 %v2388_v53 }
  0xb9   : > { %1757 = vrsqrt.f32 %v2390_v55  ;;  %vm448_vm4 = vweird.f32 %v2390_v55 }
  0xba   : > { %1759 = vrsqrt.f32 %v2400_v11 }
  0xbd   : > { %v421_v15 = vpop.xlane.xlu1 %420  ;;  %v401_v16 = vpop.xlane.xlu2 %400 }
  0xbe   : > { %v2405_v17 = vpop.eup %1755  ;;  %v2407_v21 = vmax.f32 %v421_v15, 1e-24  ;;  %v2409_v22 = vmax.f32 %v401_v16, 1e-24  ;;  %v397_v28 = vpop.xlane.xlu0 %396 }
  0xbf   : > { %v563_v29 = vmul.f32 %v2405_v17, %v2388_v53  ;;  %v2414_v31 = vmax.f32 %v397_v28, 1e-24  ;;  %v2417_v39 = vpop.eup %1757  ;;  %vm569_vm0 = vweird.f32 %v2405_v17 }
  0xc0   : > { %1761 = vrsqrt.f32 %v2407_v21  ;;  %v443_v33 = vmul.f32 %v2417_v39, %v2390_v55  ;;  %v2427_v38 = vpop.eup %1759  ;;  %vm449_vm2 = vweird.f32 %v2417_v39  ;;  %vm2445_vm3 = vmor %vm568_vm1, %vm569_vm0  ;;  %vm578_vm7 = vweird.f32 %v2407_v21 }
  0xc1   : > { %v564_v32 = vmul.f32 %v2405_v17, %v563_v29  ;;  %1763 = vrsqrt.f32 %v2409_v22  ;;  %v463_v62 = vmul.f32 %v2427_v38, %v2400_v11  ;;  %vm2466_vm6 = vmor %vm448_vm4, %vm449_vm2  ;;  %vm458_vm10 = vweird.f32 %v2414_v31 }
  0xc2   : > { %1765 = vrsqrt.f32 %v2414_v31  ;;  %v444_v35 = vmul.f32 %v2417_v39, %v443_v33  ;;  %vm478_vm12 = vweird.f32 %v2409_v22  ;;  %vm468_vm0 = vweird.f32 %v2400_v11 }
  0xc3   : > { %v565_v34 = vmul.f32 0.5, %v564_v32  ;;  %vm469_vm1 = vweird.f32 %v2427_v38 }
  0xc4   : > { %v445_v41 = vmul.f32 0.5, %v444_v35  ;;  %v464_v35 = vmul.f32 %v2427_v38, %v463_v62 }
  0xc5   : > { %v566_v48 = vsub.f32 1.5, %v565_v34  ;;  %v425_v42 = vpop.xlane.xlu1 %424  ;;  %v403_v61 = vpop.xlane.xlu2 %402 }
  0xc6   : > { %v1762_v43 = vpop.eup %1761  ;;  %v2429_v44 = vmax.f32 %v425_v42, 1e-24  ;;  %v423_v45 = vpop.xlane.xlu0 %422  ;;  %v446_v47 = vsub.f32 1.5, %v445_v41  ;;  %v2457_v28 = vmax.f32 %v403_v61, 1e-24 }
  0xc7   : > { %v2431_v46 = vpop.eup %1763  ;;  %v573_v50 = vmul.f32 %v1762_v43, %v2407_v21  ;;  %v567_v56 = vmul.f32 %v2405_v17, %v566_v48  ;;  %v2450_v16 = vmax.f32 %v423_v45, 1e-24  ;;  %vm579_vm5 = vweird.f32 %v1762_v43  ;;  %v2482_v45 = vld [vmem:[#allocation5] ss:$0 sm:$0xff] }
  0xc8   : > { %v1766_v54 = vpop.eup %1765  ;;  %1767 = vrsqrt.f32 %v2429_v44  ;;  %v473_v59 = vmul.f32 %v2431_v46, %v2409_v22  ;;  %v447_v63 = vmul.f32 %v2417_v39, %v446_v47  ;;  %vm580_vm9 = vmor %vm578_vm7, %vm579_vm5  ;;  %vm479_vm13 = vweird.f32 %v2431_v46 }
  0xc9   : > { %v574_v57 = vmul.f32 %v1762_v43, %v573_v50  ;;  %v453_v60 = vmul.f32 %v1766_v54, %v2414_v31  ;;  %v571_v53 = vsel %vm2445_vm3, %v2405_v17, %v567_v56  ;;  %1769 = vrsqrt.f32 %v2450_v16  ;;  %vm2517_vm2 = vmor %vm478_vm12, %vm479_vm13 }
  0xca   : > { %v474_v32 = vmul.f32 %v2431_v46, %v473_v59  ;;  %vm459_vm8 = vweird.f32 %v1766_v54  ;;  %v451_v17 = vsel %vm2466_vm6, %v2417_v39, %v447_v63  ;;  %1771 = vrsqrt.f32 %v2457_v28  ;;  %vm2545_vm6 = vmor %vm468_vm0, %vm469_vm1 }
  0xcb   : > { %v575_v4 = vmul.f32 0.5, %v574_v57  ;;  %v454_v15 = vmul.f32 %v1766_v54, %v453_v60  ;;  %v614_v47 = vmul.f32 %v571_v53, %v2269_v0  ;;  %vm460_vm11 = vmor %vm458_vm10, %vm459_vm8  ;;  %v602_v36 = vmul.f32 %v451_v17, %v2275_v2 }
  0xcc   : > { %v475_v50 = vmul.f32 0.5, %v474_v32  ;;  %v465_v60 = vmul.f32 0.5, %v464_v35  ;;  %vm598_vm14 = vweird.f32 %v2429_v44  ;;  %vm588_vm4 = vweird.f32 %v2450_v16 }
  0xcd   : > { %v576_v29 = vsub.f32 1.5, %v575_v4  ;;  %v455_v33 = vmul.f32 0.5, %v454_v15  ;;  %v634_v5 = vmul.f32 %v2482_v45, %v614_v47  ;;  %v622_v15 = vmul.f32 %v2482_v45, %v602_v36  ;;  %v407_v23 = vpop.xlane.xlu1 %406 }
  0xce   : > { %v2461_v34 = vpop.eup %1767  ;;  %v405_v55 = vpop.xlane.xlu0 %404  ;;  %v476_v4 = vsub.f32 1.5, %v475_v50  ;;  %vm488_vm8 = vweird.f32 %v2457_v28 }
  0xcf   : > { %v577_v48 = vmul.f32 %v1762_v43, %v576_v29  ;;  %v456_v41 = vsub.f32 1.5, %v455_v33  ;;  %v593_v42 = vmul.f32 %v2461_v34, %v2429_v44  ;;  %v2480_v21 = vmax.f32 %v405_v55, 1e-24  ;;  %v1770_v59 = vpop.eup %1769 }
  0xd0   : > { %v583_v0 = vmul.f32 %v1770_v59, %v2450_v16  ;;  %vm599_vm15 = vweird.f32 %v2461_v34  ;;  %v477_v55 = vmul.f32 %v2431_v46, %v476_v4  ;;  %vm589_vm5 = vweird.f32 %v1770_v59 }
  0xd1   : > { %v581_v39 = vsel %vm580_vm9, %v1762_v43, %v577_v48  ;;  %v457_v56 = vmul.f32 %v1766_v54, %v456_v41  ;;  %v594_v57 = vmul.f32 %v2461_v34, %v593_v42  ;;  %1773 = vrsqrt.f32 %v2480_v21  ;;  %v409_v41 = vpop.xlane.xlu2 %408  ;;  %vm2530_vm3 = vmor %vm598_vm14, %vm599_vm15 }
  0xd2   : > { %v615_v31 = vmul.f32 %v581_v39, %v2284_v6  ;;  %v2497_v6 = vpop.eup %1771  ;;  %v2539_v39 = vmax.f32 %v407_v23, 1e-24  ;;  %v2549_v50 = vmax.f32 %v409_v41, 1e-24  ;;  %vm590_vm7 = vmor %vm588_vm4, %vm589_vm5  ;;  %vm498_vm10 = vweird.f32 %v2480_v21 }
  0xd3   : > { %v461_v61 = vsel %vm460_vm11, %v1766_v54, %v457_v56  ;;  %v595_v62 = vmul.f32 0.5, %v594_v57  ;;  %v584_v54 = vmul.f32 %v1770_v59, %v583_v0  ;;  %v483_v3 = vmul.f32 %v2497_v6, %v2457_v28 }
  0xd4   : > { %v603_v43 = vmul.f32 %v461_v61, %v2290_v8  ;;  %v635_v63 = vmul.f32 %v2482_v45, %v615_v31  ;;  %v466_v8 = vsub.f32 1.5, %v465_v60  ;;  %v481_v56 = vsel %vm2517_vm2, %v2431_v46, %v477_v55 }
  0xd5   : > { %v596_v2 = vsub.f32 1.5, %v595_v62  ;;  %v585_v33 = vmul.f32 0.5, %v584_v54  ;;  %1775 = vrsqrt.f32 %v2539_v39  ;;  %v605_v46 = vmul.f32 %v481_v56, %v2287_v7 }
  0xd6   : > { %v623_v51 = vmul.f32 %v2482_v45, %v603_v43  ;;  %v2501_v53 = vpack.c.bf16 %v635_v63, %v634_v5  ;;  %v467_v47 = vmul.f32 %v2427_v38, %v466_v8  ;;  %1777 = vrsqrt.f32 %v2549_v50  ;;  %v413_v63 = vpop.xlane.xlu1 %412  ;;  %v411_v54 = vpop.xlane.xlu0 %410 }
  0xd7   : > { %v597_v29 = vmul.f32 %v2461_v34, %v596_v2  ;;  %v2507_v32 = vpop.eup %1773  ;;  %v586_v22 = vsub.f32 1.5, %v585_v33  ;;  %vm489_vm9 = vweird.f32 %v2497_v6  ;;  %vm508_vm14 = vweird.f32 %v2539_v39 }
  0xd8   : > { %v638_v35 = vpack.c.bf16 %v623_v51, %v622_v15  ;;  %852 = vmatmul.bf16.vlgmr.msra.gmra.mxu3 %v2501_v53  ;;  %v493_v48 = vmul.f32 %v2507_v32, %v2480_v21  ;;  %v471_v31 = vsel %vm2545_vm6, %v2427_v38, %v467_v47  ;;  %v625_v38 = vmul.f32 %v2482_v45, %v605_v46  ;;  %vm2584_vm12 = vmor %vm488_vm8, %vm489_vm9 }
  0xd9   : > { %1621 = vmatpush.bf16.msra.mxu3 %v2350_v40  ;;  %v601_v40 = vsel %vm2530_vm3, %v2461_v34, %v597_v29  ;;  %v587_v16 = vmul.f32 %v1770_v59, %v586_v22  ;;  %v484_v34 = vmul.f32 %v2497_v6, %v483_v3  ;;  %vm499_vm11 = vweird.f32 %v2507_v32 }
  0xda   : > { %822 = vmatmul.bf16.vlgmr.msra.gmra.mxu0 %v638_v35  ;;  %871 = vmatmul.bf16.vlgmr.msra.gmra.mxu1 %v638_v35  ;;  %v494_v57 = vmul.f32 %v2507_v32, %v493_v48  ;;  %v617_v11 = vmul.f32 %v601_v40, %v2299_v12  ;;  %vm500_vm13 = vmor %vm498_vm10, %vm499_vm11  ;;  %v2594_v15 = vmax.f32 %v413_v63, 1e-24  ;;  %v2596_v51 = vmax.f32 %v411_v54, 1e-24 }
  0xdb   : > { %920 = vmatmul.bf16.vlgmr.msra.gmra.mxu2 %v638_v35  ;;  %v591_v36 = vsel %vm590_vm7, %v1770_v59, %v587_v16  ;;  %v485_v61 = vmul.f32 0.5, %v484_v34  ;;  %v2570_v0 = vpop.eup %1775  ;;  %vm518_vm0 = vweird.f32 %v2549_v50 }
  0xdc   : > { %v616_v60 = vmul.f32 %v591_v36, %v2305_v14  ;;  %v495_v62 = vmul.f32 0.5, %v494_v57  ;;  %v637_v59 = vmul.f32 %v2482_v45, %v617_v11  ;;  %v2573_v5 = vpop.eup %1777  ;;  %v503_v2 = vmul.f32 %v2570_v0, %v2539_v39 }
  0xdd   : > { %1622 = vmatpush.bf16.msra.mxu3 %v2356_v49  ;;  %v604_v49 = vmul.f32 %v471_v31, %v2272_v1  ;;  %v486_v43 = vsub.f32 1.5, %v485_v61  ;;  %v513_v21 = vmul.f32 %v2573_v5, %v2549_v50  ;;  %1779 = vrsqrt.f32 %v2594_v15 }
  0xde   : > { %v636_v12 = vmul.f32 %v2482_v45, %v616_v60  ;;  %v496_v14 = vsub.f32 1.5, %v495_v62  ;;  %v504_v33 = vmul.f32 %v2570_v0, %v503_v2  ;;  %1781 = vrsqrt.f32 %v2596_v51  ;;  %v417_v40 = vpop.xlane.xlu0 %416 }
  0xdf   : > { %v624_v1 = vmul.f32 %v2482_v45, %v604_v49  ;;  %v514_v35 = vmul.f32 %v2573_v5, %v513_v21  ;;  %vm509_vm15 = vweird.f32 %v2570_v0  ;;  %vm519_vm1 = vweird.f32 %v2573_v5 }
  0xe0   : > { %v2578_v7 = vpack.c.bf16 %v637_v59, %v636_v12  ;;  %v497_v28 = vmul.f32 %v2507_v32, %v496_v14  ;;  %v505_v55 = vmul.f32 0.5, %v504_v33  ;;  %vm2619_vm2 = vmor %vm508_vm14, %vm509_vm15  ;;  %v437_v44 = vmax.f32 %v417_v40, 1e-24 }
  0xe1   : > { %1623 = vmatpush.bf16.msra.mxu3 %v2362_v58  ;;  %v639_v58 = vpack.c.bf16 %v625_v38, %v624_v1  ;;  %v515_v17 = vmul.f32 0.5, %v514_v35  ;;  %vm520_vm3 = vmor %vm518_vm0, %vm519_vm1  ;;  %vm538_vm4 = vweird.f32 %v2594_v15  ;;  %vm528_vm6 = vweird.f32 %v2596_v51 }
  0xe2   : > { %v501_v29 = vsel %vm500_vm13, %v2507_v32, %v497_v28  ;;  %v506_v48 = vsub.f32 1.5, %v505_v55 }
  0xe3   : > { %v607_v23 = vmul.f32 %v501_v29, %v2320_v20  ;;  %v1780_v3 = vpop.eup %1779  ;;  %v516_v41 = vsub.f32 1.5, %v515_v17  ;;  %v415_v20 = vpop.xlane.xlu2 %414  ;;  %v678_v17 = vld [vmem:[#allocation8] sm:$0x7] }
  0xe4   : > { %v533_v22 = vmul.f32 %v1780_v3, %v2594_v15  ;;  %v436_v39 = vmax.f32 %v415_v20, 1e-24  ;;  %vm539_vm5 = vweird.f32 %v1780_v3 }
  0xe5   : > { %1624 = vmatpush.bf16.msra.mxu3 %v2368_v9  ;;  %v487_v9 = vmul.f32 %v2497_v6, %v486_v43  ;;  %v627_v32 = vmul.f32 %v2482_v45, %v607_v23  ;;  %vm540_vm8 = vmor %vm538_vm4, %vm539_vm5 }
  0xe6   : > { %v534_v56 = vmul.f32 %v1780_v3, %v533_v22  ;;  %1783 = vrsqrt.f32 %v436_v39  ;;  %vm548_vm10 = vweird.f32 %v436_v39 }
  0xe7   : > { %v491_v8 = vsel %vm2584_vm12, %v2497_v6, %v487_v9  ;;  %1785 = vrsqrt.f32 %v437_v44  ;;  %vm558_vm12 = vweird.f32 %v437_v44 }
  0xe8   : > { %857 = vmatmul.bf16.gmra.mxu3 %v2578_v7  ;;  %v535_v11 = vmul.f32 0.5, %v534_v56 }
  0xe9   : > { %1625 = vmatpush.bf16.msra.mxu3 %v2374_v27  ;;  %v606_v27 = vmul.f32 %v491_v8, %v2302_v13 }
  0xea   : > { %827 = vmatmul.bf16.gmra.mxu0 %v639_v58  ;;  %876 = vmatmul.bf16.gmra.mxu1 %v639_v58  ;;  %v536_v62 = vsub.f32 1.5, %v535_v11 }
  0xeb   : > { %925 = vmatmul.bf16.gmra.mxu2 %v639_v58  ;;  %v626_v6 = vmul.f32 %v2482_v45, %v606_v27 }
  0xed   : > { %1626 = vmatpush.bf16.msra.mxu3 %v2380_v37  ;;  %v1782_v37 = vpop.eup %1781  ;;  %v640_v13 = vpack.c.bf16 %v627_v32, %v626_v6  ;;  %v2647_v32 = vperm.slane %v678_v17, 0 }
  0xee   : > { %v523_v47 = vmul.f32 %v1782_v37, %v2596_v51  ;;  %v1784_v61 = vpop.eup %1783  ;;  %vm529_vm7 = vweird.f32 %v1782_v37 }
  0xef   : > { %v1786_v12 = vpop.eup %1785  ;;  %v543_v38 = vmul.f32 %v1784_v61, %v436_v39  ;;  %vm530_vm9 = vmor %vm528_vm6, %vm529_vm7  ;;  %vm549_vm11 = vweird.f32 %v1784_v61 }
  0xf0   : > { %v524_v34 = vmul.f32 %v1782_v37, %v523_v47  ;;  %vm559_vm13 = vweird.f32 %v1786_v12  ;;  %vm550_vm14 = vmor %vm548_vm10, %vm549_vm11 }
  0xf1   : > { %1627 = vmatpush.bf16.msra.mxu3 %v2386_v52  ;;  %v507_v52 = vmul.f32 %v2570_v0, %v506_v48  ;;  %vm560_vm15 = vmor %vm558_vm12, %vm559_vm13 }
  0xf2   : > { %v525_v31 = vmul.f32 0.5, %v524_v34 }
  0xf3   : > { %v511_v16 = vsel %vm2619_vm2, %v2570_v0, %v507_v52  ;;  %v553_v0 = vmul.f32 %v1786_v12, %v437_v44  ;;  %v2656_v52 = vperm.slane %v678_v17, 2 }
  0xf4   : > { %v608_v57 = vmul.f32 %v511_v16, %v2314_v18  ;;  %v526_v49 = vsub.f32 1.5, %v525_v31  ;;  %v537_v18 = vmul.f32 %v1780_v3, %v536_v62 }
  0xf5   : > { %1628 = vmatpush.bf16.msra.mxu3 %v2398_v10  ;;  %v517_v10 = vmul.f32 %v2573_v5, %v516_v41  ;;  %v554_v1 = vmul.f32 %v1786_v12, %v553_v0 }
  0xf6   : > { %v628_v60 = vmul.f32 %v2482_v45, %v608_v57  ;;  %v541_v43 = vsel %vm540_vm8, %v1780_v3, %v537_v18 }
  0xf7   : > { %v521_v50 = vsel %vm520_vm3, %v2573_v5, %v517_v10  ;;  %v544_v5 = vmul.f32 %v1784_v61, %v543_v38  ;;  %v611_v63 = vmul.f32 %v541_v43, %v2329_v24  ;;  %v555_v4 = vmul.f32 0.5, %v554_v1 }
  0xf8   : > { %901 = vmatmul.bf16.vlgmr.msrb.gmra.mxu3 %v2501_v53  ;;  %v609_v36 = vmul.f32 %v521_v50, %v2317_v19  ;;  %v527_v19 = vmul.f32 %v1782_v37, %v526_v49 }
  0xf9   : > { %v545_v9 = vmul.f32 0.5, %v544_v5  ;;  %v631_v2 = vmul.f32 %v2482_v45, %v611_v63  ;;  %v556_v54 = vsub.f32 1.5, %v555_v4 }
  0xfa   : > { %832 = vmatmul.bf16.gmra.mxu0 %v640_v13  ;;  %881 = vmatmul.bf16.gmra.mxu1 %v640_v13  ;;  %v629_v46 = vmul.f32 %v2482_v45, %v609_v36  ;;  %v531_v14 = vsel %vm530_vm9, %v1782_v37, %v527_v19 }
  0xfb   : > { %930 = vmatmul.bf16.gmra.mxu2 %v640_v13  ;;  %v610_v58 = vmul.f32 %v531_v14, %v2335_v26  ;;  %v546_v21 = vsub.f32 1.5, %v545_v9  ;;  %v557_v26 = vmul.f32 %v1786_v12, %v556_v54 }
  0xfc   : > { %v641_v59 = vpack.c.bf16 %v629_v46, %v628_v60 }
  0xfd   : > { %v630_v28 = vmul.f32 %v2482_v45, %v610_v58  ;;  %v547_v51 = vmul.f32 %v1784_v61, %v546_v21  ;;  %v561_v8 = vsel %vm560_vm15, %v1786_v12, %v557_v26 }
  0xfe   : > { %v613_v33 = vmul.f32 %v561_v8, %v2344_v30 }
  0xff   : > { %v642_v15 = vpack.c.bf16 %v631_v2, %v630_v28  ;;  %v551_v24 = vsel %vm550_vm14, %v1784_v61, %v547_v51 }
 0x100   : > { %v612_v29 = vmul.f32 %v551_v24, %v2332_v25  ;;  %v633_v27 = vmul.f32 %v2482_v45, %v613_v33  ;;  %v2649_v25 = vperm.slane %v678_v17, 1 }
 0x102   : > { %v632_v35 = vmul.f32 %v2482_v45, %v612_v29 }
 0x104   : > { %v643_v23 = vpack.c.bf16 %v633_v27, %v632_v35 }
 0x108   : > { %906 = vmatmul.bf16.gmra.mxu3 %v2578_v7 }
 0x10a   : > { %837 = vmatmul.bf16.gmra.mxu0 %v641_v59  ;;  %886 = vmatmul.bf16.gmra.mxu1 %v641_v59 }
 0x10b   : > { %935 = vmatmul.bf16.gmra.mxu2 %v641_v59 }
 0x118   : > { %950 = vmatmul.bf16.vlgmr.msra.gmra.mxu3 %v2501_v53 }
 0x11a   : > { %842 = vmatmul.bf16.gmra.mxu0 %v642_v15  ;;  %891 = vmatmul.bf16.gmra.mxu1 %v642_v15 }
 0x11b   : > { %940 = vmatmul.bf16.gmra.mxu2 %v642_v15 }
 0x128   : > { %955 = vmatmul.bf16.gmra.mxu3 %v2578_v7 }
 0x12a   : > { %847 = vmatmul.bf16.gmra.mxu0 %v643_v23  ;;  %896 = vmatmul.bf16.gmra.mxu1 %v643_v23 }
 0x12b   : > { %945 = vmatmul.bf16.gmra.mxu2 %v643_v23 }
 0x157   : > { %v823_v53 = vpop.f32.mrf.mxu0  ;;  %v872_v55 = vpop.f32.mrf.mxu1 }
 0x158   : > { %v824_v45 = vadd.f32 %v823_v53, %v2647_v32  ;;  %v873_v41 = vadd.f32 %v872_v55, %v2649_v25 }
 0x15b   : > { %v853_v6 = vpop.f32.mrf.mxu3 }
 0x15c   : > { %v854_v10 = vadd.f32 %v853_v6, %v2647_v32 }
 0x15e   : > { %v921_v3 = vpop.f32.mrf.mxu2 }
 0x15f   : > { %v825_v30 = vpop.f32.mrf.mxu0  ;;  %v874_v48 = vpop.f32.mrf.mxu1  ;;  %v922_v39 = vadd.f32 %v921_v3, %v2656_v52 }
 0x160   : > { %v826_v7 = vadd.f32 %v825_v30, %v2647_v32  ;;  %v875_v37 = vadd.f32 %v874_v48, %v2649_v25 }
 0x162   : > { %v1467_v13 = vpack.c.bf16 %v826_v7, %v824_v45  ;;  %v1507_v20 = vpack.c.bf16 %v875_v37, %v873_v41 }
 0x163   : > { %v855_v42 = vpop.f32.mrf.mxu3 }
 0x164   : > { %1468 = vst [vmem:[%s2659_s6] sm:$0xff] %v1467_v13   ;;  %v856_v22 = vadd.f32 %v855_v42, %v2647_v32 }
 0x165   : > { %1508 = vst [vmem:[%s2663_s21] sm:$0xff] %v1507_v20  }
 0x166   : > { %v1497_v47 = vpack.c.bf16 %v856_v22, %v854_v10  ;;  %v923_v40 = vpop.f32.mrf.mxu2 }
 0x167   : > { %v924_v44 = vadd.f32 %v923_v40, %v2656_v52  ;;  %v828_v16 = vpop.f32.mrf.mxu0  ;;  %v877_v50 = vpop.f32.mrf.mxu1 }
 0x168   : > { %1589 = vst [vmem:[%s2659_s6 + $0x30] sm:$0xff] %v1497_v47   ;;  %v829_v31 = vadd.f32 %v828_v16, %v2647_v32  ;;  %v878_v60 = vadd.f32 %v877_v50, %v2649_v25 }
 0x169   : > { %v1547_v56 = vpack.c.bf16 %v924_v44, %v922_v39 }
 0x16b   : > { %1548 = vst [vmem:[%s2669_s26] sm:$0xff] %v1547_v56   ;;  %v858_v34 = vpop.f32.mrf.mxu3 }
 0x16c   : > { %v859_v59 = vadd.f32 %v858_v34, %v2647_v32 }
 0x16e   : > { %v926_v57 = vpop.f32.mrf.mxu2 }
 0x16f   : > { %v830_v36 = vpop.f32.mrf.mxu0  ;;  %v879_v11 = vpop.f32.mrf.mxu1  ;;  %v927_v0 = vadd.f32 %v926_v57, %v2656_v52 }
 0x170   : > { %v831_v46 = vadd.f32 %v830_v36, %v2647_v32  ;;  %v880_v61 = vadd.f32 %v879_v11, %v2649_v25 }
 0x172   : > { %v1472_v62 = vpack.c.bf16 %v831_v46, %v829_v31  ;;  %v1512_v49 = vpack.c.bf16 %v880_v61, %v878_v60 }
 0x173   : > { %v860_v12 = vpop.f32.mrf.mxu3 }
 0x174   : > { %1584 = vst [vmem:[%s2659_s6 + $0x8] sm:$0xff] %v1472_v62   ;;  %v861_v18 = vadd.f32 %v860_v12, %v2647_v32 }
 0x175   : > { %1591 = vst [vmem:[%s2663_s21 + $0x8] sm:$0xff] %v1512_v49  }
 0x176   : > { %v1502_v19 = vpack.c.bf16 %v861_v18, %v859_v59  ;;  %v928_v38 = vpop.f32.mrf.mxu2 }
 0x177   : > { %v929_v43 = vadd.f32 %v928_v38, %v2656_v52  ;;  %v833_v14 = vpop.f32.mrf.mxu0  ;;  %v882_v5 = vpop.f32.mrf.mxu1 }
 0x178   : > { %1590 = vst [vmem:[%s2659_s6 + $0x38] sm:$0xff] %v1502_v19   ;;  %v834_v28 = vadd.f32 %v833_v14, %v2647_v32  ;;  %v883_v2 = vadd.f32 %v882_v5, %v2649_v25 }
 0x179   : > { %v1552_v1 = vpack.c.bf16 %v929_v43, %v927_v0 }
 0x17b   : > { %1598 = vst [vmem:[%s2669_s26 + $0x8] sm:$0xff] %v1552_v1   ;;  %v902_v58 = vpop.f32.mrf.mxu3 }
 0x17c   : > { %v903_v24 = vadd.f32 %v902_v58, %v2649_v25 }
 0x17e   : > { %v931_v63 = vpop.f32.mrf.mxu2 }
 0x17f   : > { %v835_v9 = vpop.f32.mrf.mxu0  ;;  %v884_v4 = vpop.f32.mrf.mxu1  ;;  %v932_v35 = vadd.f32 %v931_v63, %v2656_v52 }
 0x180   : > { %v836_v21 = vadd.f32 %v835_v9, %v2647_v32  ;;  %v885_v54 = vadd.f32 %v884_v4, %v2649_v25 }
 0x182   : > { %v1477_v15 = vpack.c.bf16 %v836_v21, %v834_v28  ;;  %v1517_v51 = vpack.c.bf16 %v885_v54, %v883_v2 }
 0x183   : > { %v904_v26 = vpop.f32.mrf.mxu3 }
 0x184   : > { %1585 = vst [vmem:[%s2659_s6 + $0x10] sm:$0xff] %v1477_v15   ;;  %v905_v8 = vadd.f32 %v904_v26, %v2649_v25 }
 0x185   : > { %1592 = vst [vmem:[%s2663_s21 + $0x10] sm:$0xff] %v1517_v51  }
 0x186   : > { %v1537_v29 = vpack.c.bf16 %v905_v8, %v903_v24  ;;  %v933_v33 = vpop.f32.mrf.mxu2 }
 0x187   : > { %v934_v27 = vadd.f32 %v933_v33, %v2656_v52  ;;  %v838_v23 = vpop.f32.mrf.mxu0  ;;  %v887_v53 = vpop.f32.mrf.mxu1 }
 0x188   : > { %1596 = vst [vmem:[%s2663_s21 + $0x30] sm:$0xff] %v1537_v29   ;;  %v839_v48 = vadd.f32 %v838_v23, %v2647_v32  ;;  %v888_v45 = vadd.f32 %v887_v53, %v2649_v25 }
 0x189   : > { %v1557_v55 = vpack.c.bf16 %v934_v27, %v932_v35 }
 0x18b   : > { %1599 = vst [vmem:[%s2669_s26 + $0x10] sm:$0xff] %v1557_v55   ;;  %v907_v17 = vpop.f32.mrf.mxu3 }
 0x18c   : > { %v908_v42 = vadd.f32 %v907_v17, %v2649_v25 }
 0x18e   : > { %v936_v6 = vpop.f32.mrf.mxu2 }
 0x18f   : > { %v840_v3 = vpop.f32.mrf.mxu0  ;;  %v889_v30 = vpop.f32.mrf.mxu1  ;;  %v937_v40 = vadd.f32 %v936_v6, %v2656_v52 }
 0x190   : > { %v841_v41 = vadd.f32 %v840_v3, %v2647_v32  ;;  %v890_v7 = vadd.f32 %v889_v30, %v2649_v25 }
 0x192   : > { %v1482_v37 = vpack.c.bf16 %v841_v41, %v839_v48  ;;  %v1522_v13 = vpack.c.bf16 %v890_v7, %v888_v45 }
 0x193   : > { %v909_v20 = vpop.f32.mrf.mxu3 }
 0x194   : > { %1586 = vst [vmem:[%s2659_s6 + $0x18] sm:$0xff] %v1482_v37   ;;  %v910_v10 = vadd.f32 %v909_v20, %v2649_v25 }
 0x195   : > { %1593 = vst [vmem:[%s2663_s21 + $0x18] sm:$0xff] %v1522_v13  }
 0x196   : > { %v1542_v22 = vpack.c.bf16 %v910_v10, %v908_v42  ;;  %v938_v47 = vpop.f32.mrf.mxu2 }
 0x197   : > { %v939_v39 = vadd.f32 %v938_v47, %v2656_v52  ;;  %v843_v44 = vpop.f32.mrf.mxu0  ;;  %v892_v16 = vpop.f32.mrf.mxu1 }
 0x198   : > { %1597 = vst [vmem:[%s2663_s21 + $0x38] sm:$0xff] %v1542_v22   ;;  %v844_v11 = vadd.f32 %v843_v44, %v2647_v32  ;;  %v893_v31 = vadd.f32 %v892_v16, %v2649_v25 }
 0x199   : > { %v1562_v50 = vpack.c.bf16 %v939_v39, %v937_v40 }
 0x19b   : > { %1600 = vst [vmem:[%s2669_s26 + $0x18] sm:$0xff] %v1562_v50   ;;  %v951_v56 = vpop.f32.mrf.mxu3 }
 0x19c   : > { %v952_v12 = vadd.f32 %v951_v56, %v2656_v52 }
 0x19e   : > { %v941_v34 = vpop.f32.mrf.mxu2 }
 0x19f   : > { %v845_v57 = vpop.f32.mrf.mxu0  ;;  %v894_v36 = vpop.f32.mrf.mxu1  ;;  %v942_v38 = vadd.f32 %v941_v34, %v2656_v52 }
 0x1a0   : > { %v846_v60 = vadd.f32 %v845_v57, %v2647_v32  ;;  %v895_v46 = vadd.f32 %v894_v36, %v2649_v25 }
 0x1a2   : > { %v1487_v61 = vpack.c.bf16 %v846_v60, %v844_v11  ;;  %v1527_v62 = vpack.c.bf16 %v895_v46, %v893_v31 }
 0x1a3   : > { %v953_v49 = vpop.f32.mrf.mxu3 }
 0x1a4   : > { %1587 = vst [vmem:[%s2659_s6 + $0x20] sm:$0xff] %v1487_v61   ;;  %v954_v59 = vadd.f32 %v953_v49, %v2656_v52 }
 0x1a5   : > { %1594 = vst [vmem:[%s2663_s21 + $0x20] sm:$0xff] %v1527_v62  }
 0x1a6   : > { %v943_v18 = vpop.f32.mrf.mxu2  ;;  %v1577_v19 = vpack.c.bf16 %v954_v59, %v952_v12 }
 0x1a7   : > { %v944_v0 = vadd.f32 %v943_v18, %v2656_v52  ;;  %v848_v43 = vpop.f32.mrf.mxu0  ;;  %v897_v14 = vpop.f32.mrf.mxu1 }
 0x1a8   : > { %1603 = vst [vmem:[%s2669_s26 + $0x30] sm:$0xff] %v1577_v19   ;;  %v849_v4 = vadd.f32 %v848_v43, %v2647_v32  ;;  %v898_v28 = vadd.f32 %v897_v14, %v2649_v25 }
 0x1a9   : > { %v1567_v5 = vpack.c.bf16 %v944_v0, %v942_v38 }
 0x1ab   : > { %1601 = vst [vmem:[%s2669_s26 + $0x20] sm:$0xff] %v1567_v5   ;;  %v956_v1 = vpop.f32.mrf.mxu3 }
 0x1ae   : > { %v946_v58 = vpop.f32.mrf.mxu2 }
 0x1af   : > { %v850_v63 = vpop.f32.mrf.mxu0  ;;  %v899_v9 = vpop.f32.mrf.mxu1 }
 0x1b0   : > { %v851_v2 = vadd.f32 %v850_v63, %v2647_v32  ;;  %v900_v21 = vadd.f32 %v899_v9, %v2649_v25  ;;  %v957_v32 = vadd.f32 %v956_v1, %v2656_v52 }
 0x1b2   : > { %v1492_v54 = vpack.c.bf16 %v851_v2, %v849_v4  ;;  %v1532_v15 = vpack.c.bf16 %v900_v21, %v898_v28 }
 0x1b3   : > { %v958_v51 = vpop.f32.mrf.mxu3 }
 0x1b4   : > { %1588 = vst [vmem:[%s2659_s6 + $0x28] sm:$0xff] %v1492_v54   ;;  %v959_v25 = vadd.f32 %v958_v51, %v2656_v52 }
 0x1b5   : > { %1595 = vst [vmem:[%s2663_s21 + $0x28] sm:$0xff] %v1532_v15  }
 0x1b6   : > { %v948_v26 = vpop.f32.mrf.mxu2  ;;  %v1582_v24 = vpack.c.bf16 %v959_v25, %v957_v32 }
 0x1b7   : > { %1934 = shalt.err (!%p1931_p13)
}
 0x1b8   : > { %s2082_s19 = smov 64   ;;  %s2083_s18 = smov 4   ;;  %v947_v8 = vadd.f32 %v946_v58, %v2656_v52  ;;  %v949_v29 = vadd.f32 %v948_v26, %v2656_v52 }
 0x1b9   : > { %1644 = dma.vmem_to_hbm [thread:$0]  (%p2221_p3), %s2737_s25, 1024, %s1104_s29, %s2760_s15, %s2082_s19, %s2082_s19, %s2083_s18  }
 0x1ba   : > { %s1058_s9 = scalar_lea.sflag [#allocation4], %s2250_s1  ;;  %s1949_s7 = sshra.s32 %s1085_s11, 4  ;;  %s1950_s7 = int_to_ptr.hbm [resolvable:$true] %s1949_s7 }
 0x1bb   : > { %s1951_s16 = scalar_lea.hbm %s1950_s7, 64  ;;  %s1955_s17 = scalar_lea.hbm %s2855_s4, 256 }
 0x1bc   : > { %p1952_p0 = scmp.ne.s32.totalorder %s1950_s7, %s1951_s16  ;;  %p1956_p9 = scmp.lt.s32.totalorder %s1950_s7, %s2855_s4 }
 0x1bd   : > { %p1957_p2 = scmp.lt.s32.totalorder %s1955_s17, %s1951_s16 }
 0x1be   : > { %p1953_p5 = pnand %p1952_p0, %p2221_p3 }
 0x1bf   : > { %p1958_p1 = por %p1957_p2, %p1956_p9 }
 0x1c0   : > { %p1954_p7 = pneg %p1953_p5 }
 0x1c2   : > { %p1959_p4 = pnand %p1958_p1, %p1954_p7 }
 0x1c4   : > { %1962 = shalt.err (!%p1959_p4)
}
 0x1c5   : > { %1643 = dma.vmem_to_hbm [thread:$0]  (%p2221_p3), %s2735_s24, 1024, %s1085_s11, %s1058_s9, %s2082_s19, %s2082_s19, %s2083_s18   ;;  %v1572_v52 = vpack.c.bf16 %v949_v29, %v947_v8 }
 0x1c6   : > { %1604 = vst [vmem:[%s2669_s26 + $0x38] sm:$0xff] %v1582_v24   ;;  %s1977_s1 = sshra.s32 %s1123_s20, 4  ;;  %s1983_s7 = scalar_lea.hbm %s2898_s2, 256  ;;  %s1978_s1 = int_to_ptr.hbm [resolvable:$true] %s1977_s1 }
 0x1c7   : > { %1602 = vst [vmem:[%s2669_s26 + $0x28] sm:$0xff] %v1572_v52   ;;  %s1979_s25 = scalar_lea.hbm %s1978_s1, 64  ;;  %p1984_p12 = scmp.lt.s32.totalorder %s1978_s1, %s2898_s2 }
 0x1c8   : > { %p1980_p8 = scmp.ne.s32.totalorder %s1978_s1, %s1979_s25  ;;  %p1985_p13 = scmp.lt.s32.totalorder %s1983_s7, %s1979_s25 }
 0x1ca   : > { %p1981_p10 = pnand %p1980_p8, %p2221_p3  ;;  %p1986_p0 = por %p1985_p13, %p1984_p12 }
 0x1cc   : > { %p1982_p11 = pneg %p1981_p10 }
 0x1ce   : > { %p1987_p5 = pnand %p1986_p0, %p1982_p11 }
 0x1d0   : > { %1990 = shalt.err (!%p1987_p5)
}
 0x1d1   : > { %1645 = dma.vmem_to_hbm [thread:$0]  (%p2221_p3), %s1121_s12, 1024, %s1123_s20, %s2760_s15, %s2082_s19, %s2082_s19, %s2083_s18  }
 0x1d2 PF: > { %s2900_s26 = sld [smem:[#allocation19_spill]]  ;;  %p1680_p7 = scmp.ge.s32.totalorder %s2073_s28, 2 }
 0x1d4   : > { %p1664_p9 = pnand %p1680_p7, %p2176_p6 }
 0x1d6   : > { %p1665_p2 = pneg %p1664_p9 }
 0x1d8   : > { %s1137_s11 = sand.u32 1, %s2900_s26  }
 0x1d9   : > { %s1138_s9 = scalar_lea.sflag [#allocation4], %s1137_s11 }
 0x1da   : > { %2036 = dma.done.wait (%p1665_p2), %s1138_s9, 1024  }
 0x1db   : > { %2038 = vsyncadd (%p1665_p2), %s1138_s9, 4294966272  ;;  %s2902_s6 = sadd.s32 4294967294, %s2073_s28  }
 0x1dc   : > { %s1147_s8 = sand.u32 1, %s2902_s6  }
 0x1dd   : > { %s1148_s17 = scalar_lea.sflag [#allocation12], %s1147_s8 }
 0x1de   : > { %2040 = dma.done.wait (%p1665_p2), %s1148_s17, 2048  }
 0x1df   : > { %2042 = vsyncadd (%p1665_p2), %s1148_s17, 4294965248  ;;  %s28_s28 = sadd.s32 1, %s2073_s28   ;;  %s2903_s24 = sld [smem:[#allocation20_spill]] }
 0x1e0   : > { %p25_p3 = scmp.ge.s32.totalorder %s28_s28, 6   ;;  %s2904_s26 = sld [smem:[#allocation22_spill]] }
 0x1e1   : > { %s2905_s21 = smov %s2049_s22  ;;  %s2906_s22 = smov %s2053_s23 }
 0x1e2   : > { %s2907_s23 = smov %s2238_s3  ;;  %s2908_s25 = smov %s2069_s27 }
 0x1e3   : > { %s2909_s27 = smov %s2915_s14  ;;  %27 = sbr.rel (!%p25_p3) target bundleno = 16 (0x10), region = 125 }
 0x1e8   :  { %1164 = vsyncpa [#allocation3], 1 }
 0x1e9   :  { %1166 = vsyncpa [#allocation3 + $0x1], 1 }
 0x1ea   :  { %1167 = vsyncpa [#allocation6], 1 }
 0x1eb   :  { %1168 = vsyncpa [#allocation9], 1 }
 0x1ec   :  { %1169 = vsyncpa [#allocation4], 1 }
 0x1ed   :  { %1171 = vsyncpa [#allocation4 + $0x1], 1 }
 0x1ee   :  { %1172 = vsyncpa [#allocation12], 1 }
 0x1ef   :  { %1174 = vsyncpa [#allocation12 + $0x1], 1 }

</bundles_post_ra>
